<compile_context>
chip_gen: v7x
topology: tpu7x:2x2x1
jax: 0.10.0
libtpu: 0.0.40
codegen_flags: <defaults>
</compile_context>

<pallas_src>
import functools

import jax
import jax.numpy as jnp
from jax import lax
from jax.experimental import pallas as pl
from jax.experimental.pallas import tpu as pltpu

LANE = 128
SUB_ROWS = 512           # compute sub-tile (rows) inside one DMA block
NUM_CORES = 2            # megacore split on v7x; cheap 2-step loop on 1-TC chips


def _partial_counts(p_vals, g_vals, row0, valid_rows, masked):
    """(rows, LANE) tile pair -> ((1, LANE) inter partial, (1, LANE) p+g partial)."""
    # torch.logical_and/or semantics: any nonzero value (incl. NaN) is True.
    p_b = p_vals if p_vals.dtype == jnp.bool_ else (p_vals != 0)
    g_b = g_vals if g_vals.dtype == jnp.bool_ else (g_vals != 0)
    if masked:
        # Only emitted / executed for the overhang or out-of-range block.
        row_ids = row0 + lax.broadcasted_iota(jnp.int32, p_b.shape, 0)
        valid = row_ids < valid_rows
        p_b = jnp.logical_and(p_b, valid)
        g_b = jnp.logical_and(g_b, valid)
    p_i = p_b.astype(jnp.int32)
    g_i = g_b.astype(jnp.int32)
    inter_i = jnp.logical_and(p_b, g_b).astype(jnp.int32)
    inter_part = jnp.sum(inter_i, axis=0, keepdims=True)
    pg_part = jnp.sum(p_i + g_i, axis=0, keepdims=True)
    return inter_part, pg_part


def _iou_counts_kernel(p_ref, g_ref, inter_out_ref, pg_out_ref,
                       inter_acc_ref, pg_acc_ref,
                       *, tile_rows, sub_rows, inner_steps, valid_rows,
                       need_mask):
    c = pl.program_id(0)   # megacore ("parallel") axis
    i = pl.program_id(1)   # reduction ("arbitrary") axis

    @pl.when(i == 0)
    def _init():
        inter_acc_ref[...] = jnp.zeros_like(inter_acc_ref)
        pg_acc_ref[...] = jnp.zeros_like(pg_acc_ref)

    block_row0 = (c * inner_steps + i) * tile_rows
    n_sub = tile_rows // sub_rows

    def accumulate(masked):
        if n_sub == 1:
            inter_p, pg_p = _partial_counts(
                p_ref[...], g_ref[...], block_row0, valid_rows, masked)
        else:
            def body(s, carry):
                inter_v, pg_v = carry
                r0 = pl.multiple_of(s * sub_rows, sub_rows)
                ip, pp = _partial_counts(
                    p_ref[pl.ds(r0, sub_rows), :],
                    g_ref[pl.ds(r0, sub_rows), :],
                    block_row0 + r0, valid_rows, masked)
                return inter_v + ip, pg_v + pp

            zero = jnp.zeros((1, LANE), jnp.int32)
            inter_p, pg_p = lax.fori_loop(0, n_sub, body, (zero, zero))
        inter_acc_ref[...] += inter_p
        pg_acc_ref[...] += pg_p

    if need_mask:
        is_interior = block_row0 + tile_rows <= valid_rows

        @pl.when(is_interior)          # mask-free fast path (all but 1 block)
        def _fast():
            accumulate(masked=False)

        @pl.when(jnp.logical_not(is_interior))   # overhang / out-of-range
        def _edge():
            accumulate(masked=True)
    else:
        accumulate(masked=False)

    @pl.when(i == pl.num_programs(1) - 1)
    def _finalize():
        inter_out_ref[...] = jnp.sum(
            inter_acc_ref[...], axis=1, keepdims=True).reshape(1, 1, 1)
        pg_out_ref[...] = jnp.sum(
            pg_acc_ref[...], axis=1, keepdims=True).reshape(1, 1, 1)


@functools.partial(jax.jit, static_argnames=("tile_bytes",))
def voxel_iou_loss(predicted_voxel_grid, ground_truth_voxel_grid, *,
                   tile_bytes=2 * 1024 * 1024):
    p = predicted_voxel_grid
    g = ground_truth_voxel_grid
    # TODO(synk): bool inputs cost one astype pass; pass i1 directly once
    # Mosaic bool vector loads are reliable.
    if p.dtype == jnp.bool_:
        p = p.astype(jnp.uint8)
    if g.dtype == jnp.bool_:
        g = g.astype(jnp.uint8)

    n = p.size
    assert g.size == n, "voxel grids must have the same number of elements"

    p_flat = p.reshape(-1)
    g_flat = g.reshape(-1)

    main_rows = n // LANE
    main_n = main_rows * LANE
    rem = n - main_n

    # Tail (< 128 elements): tiny XLA reduction.  Replaces the old full-array
    # jnp.pad pass.
    if rem:
        pt = p_flat[main_n:]
        gt = g_flat[main_n:]
        pt_b = pt if pt.dtype == jnp.bool_ else (pt != 0)
        gt_b = gt if gt.dtype == jnp.bool_ else (gt != 0)
        inter_tail = jnp.sum(jnp.logical_and(pt_b, gt_b).astype(jnp.int32))
        pg_tail = (jnp.sum(pt_b.astype(jnp.int32))
                   + jnp.sum(gt_b.astype(jnp.int32)))
    else:
        inter_tail = jnp.int32(0)
        pg_tail = jnp.int32(0)

    if main_rows == 0:
        inter_i = inter_tail
        pg_i = pg_tail
    else:
        if rem:
            # Only taken when n is not a multiple of 128 (uncommon for voxel
            # grids); the aligned fast path below is copy-free.
            p_main = p_flat[:main_n]
            g_main = g_flat[:main_n]
        else:
            p_main = p_flat
            g_main = g_flat
        p2 = p_main.reshape(main_rows, LANE)
        g2 = g_main.reshape(main_rows, LANE)

        itemsize = max(p.dtype.itemsize, g.dtype.itemsize)

        # DMA block: ~tile_bytes per input (no small cap); compute sub-tile of
        # SUB_ROWS rows keeps in-kernel int32 temporaries small.
        if main_rows < SUB_ROWS:
            tile_rows = main_rows        # full-dim block (always legal)
            sub_rows = main_rows
        else:
            target = tile_bytes // (LANE * itemsize)
            target = max(SUB_ROWS, (target // SUB_ROWS) * SUB_ROWS)
            tile_rows = min(target, (main_rows // SUB_ROWS) * SUB_ROWS)
            sub_rows = SUB_ROWS

        n_blocks = -(-main_rows // tile_rows)
        num_cores = min(NUM_CORES, n_blocks)
        inner_steps = -(-n_blocks // num_cores)
        need_mask = num_cores * inner_steps * tile_rows != main_rows
        last_block = n_blocks - 1

        def row_block(c, i):
            b = c * inner_steps + i
            # Out-of-range steps re-read the last block; their rows are fully
            # masked out in-kernel.
            return (jnp.minimum(b, last_block), 0)

        kernel = functools.partial(
            _iou_counts_kernel,
            tile_rows=tile_rows,
            sub_rows=sub_rows,
            inner_steps=inner_steps,
            valid_rows=main_rows,
            need_mask=need_mask,
        )

        inter_parts, pg_parts = pl.pallas_call(
            kernel,
            out_shape=(
                jax.ShapeDtypeStruct((num_cores, 1, 1), jnp.int32),
                jax.ShapeDtypeStruct((num_cores, 1, 1), jnp.int32),
            ),
            grid_spec=pltpu.PrefetchScalarGridSpec(
                num_scalar_prefetch=0,
                grid=(num_cores, inner_steps),
                in_specs=[
                    pl.BlockSpec((tile_rows, LANE), row_block),
                    pl.BlockSpec((tile_rows, LANE), row_block),
                ],
                out_specs=[
                    pl.BlockSpec((1, 1, 1), lambda c, i: (c, 0, 0)),
                    pl.BlockSpec((1, 1, 1), lambda c, i: (c, 0, 0)),
                ],
                scratch_shapes=[
                    pltpu.VMEM((1, LANE), jnp.int32),
                    pltpu.VMEM((1, LANE), jnp.int32),
                ],
            ),
            compiler_params=pltpu.CompilerParams(
                dimension_semantics=("parallel", "arbitrary"),
                vmem_limit_bytes=48 * 1024 * 1024,
            ),
        )(p2, g2)

        inter_i = jnp.sum(inter_parts) + inter_tail
        pg_i = jnp.sum(pg_parts) + pg_tail

    # Exact integer arithmetic up to the single final cast:
    # union = |p| + |g| - |p and g|, then loss = 1 - inter / (union + 1e-6).
    union_i = pg_i - inter_i
    inter_f = inter_i.astype(jnp.float32)
    union_f = union_i.astype(jnp.float32)
    iou = inter_f / (union_f + jnp.float32(1e-6))
    return jnp.float32(1.0) - iou


def _reference(pred, gt):
    pb = pred != 0
    gb = gt != 0
    inter = jnp.sum(jnp.logical_and(pb, gb).astype(jnp.float32))
    union = jnp.sum(jnp.logical_or(pb, gb).astype(jnp.float32))
    return jnp.float32(1.0) - inter / (union + jnp.float32(1e-6))


if __name__ == "__main__":
    key = jax.random.PRNGKey(0)
    k1, k2 = jax.random.split(key)

    # 1) Small f32 voxel grids: batch=2, channels=4, spatial=16x16
    #    (element count multiple of 128 -> fully copy-free wrapper path).
    shape = (2, 4, 16, 16)
    pred = (jax.random.uniform(k1, shape) > 0.5).astype(jnp.float32)
    gt = (jax.random.uniform(k2, shape) > 0.5).astype(jnp.float32)
    loss = jax.block_until_ready(voxel_iou_loss(pred, gt))
    ref = _reference(pred, gt)
    assert jnp.allclose(loss, ref, rtol=1e-5, atol=1e-6), (loss, ref)

    # 2) int8 occupancy with an element count that is NOT a multiple of 128
    #    (exercises the tail-correction path, no padding pass).
    shape8 = (3, 5, 9, 7)
    pred8 = (jax.random.uniform(k1, shape8) > 0.5).astype(jnp.int8)
    gt8 = (jax.random.uniform(k2, shape8) > 0.5).astype(jnp.int8)
    loss8 = jax.block_until_ready(voxel_iou_loss(pred8, gt8))
    ref8 = _reference(pred8, gt8)
    assert jnp.allclose(loss8, ref8, rtol=1e-5, atol=1e-6), (loss8, ref8)

    # 3) Medium int8 grid exercising the multi-block grid, the in-kernel
    #    sub-tile fori_loop, the gated overhang mask and the 2-core split.
    shape_m = (1, 40, 40, 83)
    pred_m = (jax.random.uniform(k1, shape_m) > 0.6).astype(jnp.int8)
    gt_m = (jax.random.uniform(k2, shape_m) > 0.4).astype(jnp.int8)
    loss_m = jax.block_until_ready(voxel_iou_loss(pred_m, gt_m))
    ref_m = _reference(pred_m, gt_m)
    assert jnp.allclose(loss_m, ref_m, rtol=1e-5, atol=1e-6), (loss_m, ref_m)

    print("KERNEL_OK")
</pallas_src>

<mosaic_0001>
module attributes {stable_mosaic.version = 11 : i64} {
  func.func @_iou_counts_kernel(%arg0: i32, %arg1: i32, %arg2: memref<16x128xf32, #tpu.memory_space<vmem>>, %arg3: memref<16x128xf32, #tpu.memory_space<vmem>>, %arg4: memref<1x1x1xi32, #tpu.memory_space<vmem>>, %arg5: memref<1x1x1xi32, #tpu.memory_space<vmem>>, %arg6: memref<1x128xi32, #tpu.memory_space<vmem>>, %arg7: memref<1x128xi32, #tpu.memory_space<vmem>>) attributes {dimension_semantics = [#tpu.dimension_semantics<parallel>, #tpu.dimension_semantics<arbitrary>], iteration_bounds = array<i64: 1, 1>, scalar_prefetch = 0 : i64, scratch_operands = 2 : i64, tpu.core_type = #tpu.core_type<tc>, window_params = [{transform_indices = @transform_0, window_bounds = array<i64: 16, 128>}, {transform_indices = @transform_1, window_bounds = array<i64: 16, 128>}, {transform_indices = @transform_2, window_bounds = array<i64: 1, 1, 1>}, {transform_indices = @transform_3, window_bounds = array<i64: 1, 1, 1>}]} {
    %c0_i32 = arith.constant 0 : i32
    %0 = arith.cmpi eq, %arg1, %c0_i32 : i32
    %1 = arith.extui %0 : i1 to i32
    %c0_i32_0 = arith.constant 0 : i32
    %2 = arith.cmpi ne, %1, %c0_i32_0 : i32
    scf.if %2 {
      %c0_i32_17 = arith.constant 0 : i32
      %27 = vector.broadcast %c0_i32_17 : i32 to vector<1x128xi32>
      %c0_18 = arith.constant 0 : index
      %c0_19 = arith.constant 0 : index
      %28 = vector.load %arg6[%c0_18, %c0_19] : memref<1x128xi32, #tpu.memory_space<vmem>>, vector<1x128xi32>
      tpu.vector_store %arg6[%c0_18, %c0_19], %27 {strides = array<i32>} : memref<1x128xi32, #tpu.memory_space<vmem>>, vector<1x128xi32>,
      %c0_i32_20 = arith.constant 0 : i32
      %29 = vector.broadcast %c0_i32_20 : i32 to vector<1x128xi32>
      %c0_21 = arith.constant 0 : index
      %c0_22 = arith.constant 0 : index
      %30 = vector.load %arg7[%c0_21, %c0_22] : memref<1x128xi32, #tpu.memory_space<vmem>>, vector<1x128xi32>
      tpu.vector_store %arg7[%c0_21, %c0_22], %29 {strides = array<i32>} : memref<1x128xi32, #tpu.memory_space<vmem>>, vector<1x128xi32>,
    } else {
    }
    %c0 = arith.constant 0 : index
    %c0_1 = arith.constant 0 : index
    %3 = vector.load %arg2[%c0, %c0_1] : memref<16x128xf32, #tpu.memory_space<vmem>>, vector<16x128xf32>
    %c0_2 = arith.constant 0 : index
    %c0_3 = arith.constant 0 : index
    %4 = vector.load %arg3[%c0_2, %c0_3] : memref<16x128xf32, #tpu.memory_space<vmem>>, vector<16x128xf32>
    %cst = arith.constant 0.000000e+00 : f32
    %5 = vector.broadcast %cst : f32 to vector<16x128xf32>
    %6 = arith.cmpf one, %3, %5 : vector<16x128xf32>
    %cst_4 = arith.constant 0.000000e+00 : f32
    %7 = vector.broadcast %cst_4 : f32 to vector<16x128xf32>
    %8 = arith.cmpf one, %4, %7 : vector<16x128xf32>
    %9 = arith.extui %6 : vector<16x128xi1> to vector<16x128xi32>
    %10 = arith.extui %8 : vector<16x128xi1> to vector<16x128xi32>
    %11 = arith.andi %6, %8 : vector<16x128xi1>
    %12 = arith.extui %11 : vector<16x128xi1> to vector<16x128xi32>
    %cst_5 = arith.constant dense<0> : vector<128xi32>
    %13 = vector.multi_reduction <add>, %12, %cst_5 [0] : vector<16x128xi32> to vector<128xi32>
    %14 = vector.shape_cast %13 : vector<128xi32> to vector<1x128xi32>
    %15 = arith.addi %9, %10 : vector<16x128xi32>
    %cst_6 = arith.constant dense<0> : vector<128xi32>
    %16 = vector.multi_reduction <add>, %15, %cst_6 [0] : vector<16x128xi32> to vector<128xi32>
    %17 = vector.shape_cast %16 : vector<128xi32> to vector<1x128xi32>
    %c0_7 = arith.constant 0 : index
    %c0_8 = arith.constant 0 : index
    %18 = vector.load %arg6[%c0_7, %c0_8] : memref<1x128xi32, #tpu.memory_space<vmem>>, vector<1x128xi32>
    %19 = arith.addi %18, %14 : vector<1x128xi32>
    %c0_9 = arith.constant 0 : index
    %c0_10 = arith.constant 0 : index
    %20 = vector.load %arg6[%c0_9, %c0_10] : memref<1x128xi32, #tpu.memory_space<vmem>>, vector<1x128xi32>
    tpu.vector_store %arg6[%c0_9, %c0_10], %19 {strides = array<i32>} : memref<1x128xi32, #tpu.memory_space<vmem>>, vector<1x128xi32>,
    %c0_11 = arith.constant 0 : index
    %c0_12 = arith.constant 0 : index
    %21 = vector.load %arg7[%c0_11, %c0_12] : memref<1x128xi32, #tpu.memory_space<vmem>>, vector<1x128xi32>
    %22 = arith.addi %21, %17 : vector<1x128xi32>
    %c0_13 = arith.constant 0 : index
    %c0_14 = arith.constant 0 : index
    %23 = vector.load %arg7[%c0_13, %c0_14] : memref<1x128xi32, #tpu.memory_space<vmem>>, vector<1x128xi32>
    tpu.vector_store %arg7[%c0_13, %c0_14], %22 {strides = array<i32>} : memref<1x128xi32, #tpu.memory_space<vmem>>, vector<1x128xi32>,
    %c0_i32_15 = arith.constant 0 : i32
    %24 = arith.cmpi eq, %arg1, %c0_i32_15 : i32
    %25 = arith.extui %24 : i1 to i32
    %c0_i32_16 = arith.constant 0 : i32
    %26 = arith.cmpi ne, %25, %c0_i32_16 : i32
    scf.if %26 {
      %c0_17 = arith.constant 0 : index
      %c0_18 = arith.constant 0 : index
      %27 = vector.load %arg6[%c0_17, %c0_18] : memref<1x128xi32, #tpu.memory_space<vmem>>, vector<1x128xi32>
      %cst_19 = arith.constant dense<0> : vector<1xi32>
      %28 = vector.multi_reduction <add>, %27, %cst_19 [1] : vector<1x128xi32> to vector<1xi32>
      %29 = vector.shape_cast %28 : vector<1xi32> to vector<1x1xi32>
      %30 = vector.shape_cast %29 : vector<1x1xi32> to vector<1x1x1xi32>
      %c0_20 = arith.constant 0 : index
      %c0_21 = arith.constant 0 : index
      %c0_22 = arith.constant 0 : index
      %31 = vector.load %arg4[%c0_20, %c0_21, %c0_22] : memref<1x1x1xi32, #tpu.memory_space<vmem>>, vector<1x1x1xi32>
      tpu.vector_store %arg4[%c0_20, %c0_21, %c0_22], %30 {strides = array<i32>} : memref<1x1x1xi32, #tpu.memory_space<vmem>>, vector<1x1x1xi32>,
      %c0_23 = arith.constant 0 : index
      %c0_24 = arith.constant 0 : index
      %32 = vector.load %arg7[%c0_23, %c0_24] : memref<1x128xi32, #tpu.memory_space<vmem>>, vector<1x128xi32>
      %cst_25 = arith.constant dense<0> : vector<1xi32>
      %33 = vector.multi_reduction <add>, %32, %cst_25 [1] : vector<1x128xi32> to vector<1xi32>
      %34 = vector.shape_cast %33 : vector<1xi32> to vector<1x1xi32>
      %35 = vector.shape_cast %34 : vector<1x1xi32> to vector<1x1x1xi32>
      %c0_26 = arith.constant 0 : index
      %c0_27 = arith.constant 0 : index
      %c0_28 = arith.constant 0 : index
      %36 = vector.load %arg5[%c0_26, %c0_27, %c0_28] : memref<1x1x1xi32, #tpu.memory_space<vmem>>, vector<1x1x1xi32>
      tpu.vector_store %arg5[%c0_26, %c0_27, %c0_28], %35 {strides = array<i32>} : memref<1x1x1xi32, #tpu.memory_space<vmem>>, vector<1x1x1xi32>,
    } else {
    }
    return
  }
  func.func @transform_0(%arg0: i32, %arg1: i32) -> (i32, i32) {
    %c1_i32 = arith.constant 1 : i32
    %0 = arith.muli %arg0, %c1_i32 : i32
    %1 = arith.addi %0, %arg1 : i32
    %c0_i32 = arith.constant 0 : i32
    %2 = arith.minsi %1, %c0_i32 : i32
    %c0_i32_0 = arith.constant 0 : i32
    %c0_i32_1 = arith.constant 0 : i32
    return %2, %c0_i32_0 : i32, i32
  }
  func.func @transform_1(%arg0: i32, %arg1: i32) -> (i32, i32) {
    %c1_i32 = arith.constant 1 : i32
    %0 = arith.muli %arg0, %c1_i32 : i32
    %1 = arith.addi %0, %arg1 : i32
    %c0_i32 = arith.constant 0 : i32
    %2 = arith.minsi %1, %c0_i32 : i32
    %c0_i32_0 = arith.constant 0 : i32
    %c0_i32_1 = arith.constant 0 : i32
    return %2, %c0_i32_0 : i32, i32
  }
  func.func @transform_2(%arg0: i32, %arg1: i32) -> (i32, i32, i32) {
    %c0_i32 = arith.constant 0 : i32
    %c0_i32_0 = arith.constant 0 : i32
    %c0_i32_1 = arith.constant 0 : i32
    return %arg0, %c0_i32, %c0_i32_0 : i32, i32, i32
  }
  func.func @transform_3(%arg0: i32, %arg1: i32) -> (i32, i32, i32) {
    %c0_i32 = arith.constant 0 : i32
    %c0_i32_0 = arith.constant 0 : i32
    %c0_i32_1 = arith.constant 0 : i32
    return %arg0, %c0_i32, %c0_i32_0 : i32, i32, i32
  }
}

</mosaic_0001>

<bundles_post_ra>
// kernel: voxel_iou_loss.1
= control target key start
LH: loop header
LB: loop body
LE: loop exit
PB: predicated region body
PF: predicated region fallthrough
CT: control target
= control target key end

     0   :  { %9 = vsyncpa [#allocation5], 0  ;;  %v249_v3 = vmov 0   ;;  %s310_s0 = inlined_call_operand.vmem [shape: f32[16,128], index: 0, kind: input, shape index: {}]   ;;  %s311_s1 = inlined_call_operand.vmem [shape: f32[16,128], index: 1, kind: input, shape index: {}]   ;;  %s312_s2 = inlined_call_operand.hbm [shape: s32[1,1,1], index: 2, kind: output, shape index: {0}]   ;;  %s313_s3 = inlined_call_operand.hbm [shape: s32[1,1,1], index: 3, kind: output, shape index: {1}]  }
   0x1   :  { %v85_v0 = vld [vmem:[%s310_s0] sm:$0xff]  ;;  %v86_v1 = vld [vmem:[%s310_s0 + $0x8] sm:$0xff]  ;;  %83 = vst [vmem:[#allocation2] sm:$0x1] %v249_v3  ;;  %84 = vst [vmem:[#allocation3] sm:$0x1] %v249_v3 }
   0x2   :  { %v87_v2 = vld [vmem:[%s311_s1] sm:$0xff]  ;;  %v88_v4 = vld [vmem:[%s311_s1 + $0x8] sm:$0xff]  ;;  %vm89_vm0 = vcmp.ne.f32.partialorder %v85_v0, 0.0  ;;  %vm90_vm1 = vcmp.ne.f32.partialorder %v86_v1, 0.0 }
   0x3   :  { %vm91_vm2 = vcmp.ne.f32.partialorder %v87_v2, 0.0 }
   0x4   :  { %10 = vsyncpa [#allocation7], 0  ;;  %vm92_vm3 = vcmp.ne.f32.partialorder %v88_v4, 0.0  ;;  %v93_v5 = vsel %vm89_vm0, 1, %v249_v3  ;;  %v94_v6 = vsel %vm90_vm1, 1, %v249_v3  ;;  %v95_v7 = vsel %vm91_vm2, 1, %v249_v3 }
   0x5   :  { %vm97_vm4 = vmand %vm89_vm0, %vm91_vm2  ;;  %v96_v8 = vsel %vm92_vm3, 1, %v249_v3  ;;  %v108_v10 = vadd.s32 %v95_v7, %v93_v5  ;;  %vm127_vm6 = vcmask 1040384   ;;  %s250_s0 = smov [#allocation4]   ;;  %vm141_vm7 = vcmask 0   ;;  %s251_s20 = smov [#allocation6]  }
   0x6   :  { %vm98_vm5 = vmand %vm90_vm1, %vm92_vm3  ;;  %v99_v9 = vsel %vm97_vm4, 1, %v249_v3  ;;  %v109_v12 = vadd.s32 %v96_v8, %v94_v6  ;;  %s164_s1 = sshll.u32 %s250_s0, 4  ;;  %s174_s21 = sshll.u32 %s251_s20, 4  ;;  %s165_s1 = int_to_ptr.vmem [resolvable:$true] %s164_s1  ;;  %s175_s21 = int_to_ptr.vmem [resolvable:$true] %s174_s21 }
   0x7   :  { %v100_v11 = vsel %vm98_vm5, 1, %v249_v3  ;;  %s201_s22 = scalar_lea.vmem %s165_s1, 16  ;;  %s205_s23 = scalar_lea.vmem %s165_s1, 32 }
   0x8   :  { %v101_v13 = vadd.s32 %v100_v11, %v99_v9  ;;  %v110_v14 = vadd.s32 %v109_v12, %v108_v10  ;;  %v117_v24 = vld [vmem:[#allocation2] sm:$0x1]  ;;  %v120_v27 = vld [vmem:[#allocation3] sm:$0x1]  ;;  %p202_p0 = scmp.ne.s32.totalorder %s165_s1, %s201_s22  ;;  %p206_p1 = scmp.lt.s32.totalorder %s165_s1, %s165_s1 }
   0x9   :  { %p207_p2 = scmp.lt.s32.totalorder %s205_s23, %s201_s22 }
   0xa   :  { %v102_v15 = vrot.slane %v101_v13, 4  ;;  %v111_v16 = vrot.slane %v110_v14, 4 }
   0xb   :  { %p208_p3 = por %p207_p2, %p206_p1 }
   0xc   :  { %v103_v17 = vadd.s32 %v102_v15, %v101_v13  ;;  %v112_v18 = vadd.s32 %v111_v16, %v110_v14 }
   0xd   :  { %p209_p4 = pnand %p208_p3, %p202_p0 }
   0xe   :  { %v104_v19 = vrot.slane %v103_v17, 2  ;;  %v113_v20 = vrot.slane %v112_v18, 2 }
  0x10   :  { %v105_v21 = vadd.s32 %v104_v19, %v103_v17  ;;  %v114_v22 = vadd.s32 %v113_v20, %v112_v18 }
  0x12   :  { %v106_v23 = vrot.slane %v105_v21, 1  ;;  %v115_v25 = vrot.slane %v114_v22, 1 }
  0x14   :  { %v107_v26 = vadd.s32 %v106_v23, %v105_v21  ;;  %v116_v28 = vadd.s32 %v115_v25, %v114_v22 }
  0x16   :  { %v118_v29 = vadd.s32 %v117_v24, %v107_v26  ;;  %v121_v30 = vadd.s32 %v120_v27, %v116_v28 }
  0x18   :  { %119 = vst [vmem:[#allocation2] sm:$0x1] %v118_v29  ;;  %122 = vst [vmem:[#allocation3] sm:$0x1] %v121_v30 }
  0x1f   :  { %v126_v31 = vld [vmem:[#allocation2] sm:$0x1]  ;;  %v143_v33 = vld [vmem:[#allocation3] sm:$0x1] }
  0x20   :  { %v128_v32 = vsel %vm127_vm6, %v126_v31, 0  ;;  %v144_v36 = vsel %vm127_vm6, %v143_v33, 0 }
  0x21   :  { %v130_v34 = vshrl.u32 %v128_v32, 16  ;;  %v129_v35 = vand.u32 65535, %v128_v32  ;;  %v146_v37 = vshrl.u32 %v144_v36, 16  ;;  %v145_v38 = vand.u32 65535, %v144_v36 }
  0x23   :  { %v132_v39 = vcvt.s32.f32 %v130_v34  ;;  %v131_v40 = vcvt.s32.f32 %v129_v35  ;;  %v148_v41 = vcvt.s32.f32 %v146_v37  ;;  %v147_v42 = vcvt.s32.f32 %v145_v38 }
  0x25   :  { %135 = vadd.xlane.f32.xlu0 %v132_v39  ;;  %133 = vadd.xlane.f32.xlu1 %v131_v40 }
  0x29   :  { %151 = vadd.xlane.f32.xlu0 %v148_v41  ;;  %149 = vadd.xlane.f32.xlu1 %v147_v42 }
  0xb2   :  { %v136_v43 = vpop.xlane.xlu0 %135  ;;  %v134_v44 = vpop.xlane.xlu1 %133 }
  0xb3   :  { %v138_v45 = vcvt.f32.s32 %v136_v43  ;;  %v137_v46 = vcvt.f32.s32 %v134_v44 }
  0xb5   :  { %v139_v47 = vshll.u32 %v138_v45, 16 }
  0xb6   :  { %v152_v48 = vpop.xlane.xlu0 %151  ;;  %v150_v49 = vpop.xlane.xlu1 %149 }
  0xb7   :  { %v154_v50 = vcvt.f32.s32 %v152_v48  ;;  %v153_v51 = vcvt.f32.s32 %v150_v49  ;;  %v140_v52 = vadd.s32 %v139_v47, %v137_v46 }
  0xb9   :  { %v155_v53 = vshll.u32 %v154_v50, 16  ;;  %142 = vst.msk [vmem:[#allocation4] sm:$0x1] %vm141_vm7, %v140_v52 }
  0xba   :  { %212 = shalt.err (!%p209_p4)
}
  0xbb   :  { %s213_s26 = scalar_lea.hbm %s312_s2, 16 }
  0xbc   :  { %p214_p5 = scmp.ne.s32.totalorder %s312_s2, %s213_s26  ;;  %p217_p6 = scmp.lt.u32.totalorder %s213_s26, %s312_s2 }
  0xbe   :  { %p219_p7 = pnand %p217_p6, %p214_p5 }
  0xc0   :  { %222 = shalt.err (!%p219_p7)
}
  0xc1   :  { %167 = dma.vmem_to_hbm [thread:$0]  %s165_s1, 16, %s312_s2, [#allocation5]   ;;  %v156_v54 = vadd.s32 %v155_v53, %v153_v51 }
  0xc2   :  { %s223_s6 = scalar_lea.vmem %s175_s21, 16  ;;  %s227_s7 = scalar_lea.vmem %s175_s21, 32 }
  0xc3   :  { %157 = vst.msk [vmem:[#allocation6] sm:$0x1] %vm141_vm7, %v156_v54  ;;  %p224_p8 = scmp.ne.s32.totalorder %s175_s21, %s223_s6  ;;  %p228_p9 = scmp.lt.s32.totalorder %s175_s21, %s175_s21 }
  0xc4   :  { %p229_p10 = scmp.lt.s32.totalorder %s227_s7, %s223_s6 }
  0xc6   :  { %p230_p11 = por %p229_p10, %p228_p9 }
  0xc8   :  { %p231_p12 = pnand %p230_p11, %p224_p8 }
  0xca   :  { %234 = shalt.err (!%p231_p12)
}
  0xcb   :  { %s235_s10 = scalar_lea.hbm %s313_s3, 16 }
  0xcc   :  { %p236_p13 = scmp.ne.s32.totalorder %s313_s3, %s235_s10  ;;  %p239_p0 = scmp.lt.u32.totalorder %s235_s10, %s313_s3 }
  0xce   :  { %p241_p1 = pnand %p239_p0, %p236_p13 }
  0xd0   :  { %244 = shalt.err (!%p241_p1)
}
  0xd1   :  { %177 = dma.vmem_to_hbm [thread:$0]  %s175_s21, 16, %s313_s3, [#allocation7]  }
  0xd2   :  { %245 = dma.done.wait [#allocation5], 16  }
  0xd3   :  { %246 = vsyncadd [#allocation5], 4294967280 }
  0xd4   :  { %247 = dma.done.wait [#allocation7], 16  }
  0xd5   :  { %248 = vsyncadd [#allocation7], 4294967280 }
  0xd6   :  { %184 = vsyncpa [#allocation5], 1 }
  0xd7   :  { %185 = vsyncpa [#allocation7], 1 }

</bundles_post_ra>
